<compile_context>
chip_gen: v5e
topology: v5e:2x2
jax: 0.10.0
libtpu: 0.0.40
codegen_flags: <defaults>
</compile_context>

<pallas_src>
import jax
import jax.numpy as jnp
import numpy as np
from jax.experimental import pallas as pl
from jax.experimental.pallas import tpu as pltpu

HIDDEN = 768
HID_LAYER = 16          # hidden_layer_size
N_TENSE = 16
N_ASPECT = 9
N_POS = 5
N_TOKEN = 2
N_QEVENT = 2
CLASSIFIER_SIZE = HID_LAYER + N_TENSE + N_ASPECT + N_POS   # 46

FUSED1 = 4 * HID_LAYER                                     # 64
FUSED2 = N_QEVENT + N_TENSE + N_ASPECT + N_POS             # 32
SLAB = 128                                                 # lane-dense output width

# slab column layout: tok | qe | tense | aspect | pos | zero-pad
TOK_C = (0, N_TOKEN)                                       # 0:2
QE_C = (TOK_C[1], TOK_C[1] + N_QEVENT)                     # 2:4
TENSE_C = (QE_C[1], QE_C[1] + N_TENSE)                     # 4:20
ASPECT_C = (TENSE_C[1], TENSE_C[1] + N_ASPECT)             # 20:29
POS_C = (ASPECT_C[1], ASPECT_C[1] + N_POS)                 # 29:34


def _qa_head_kernel(x_ref, w1_ref, b1_ref, m_ref, d_ref, out_ref):
    # x tile is f32 in HBM; cast per-tile here (no host-side cast/pad pass).
    x = x_ref[...].astype(jnp.bfloat16)

    # Stage 1: fused base/tense/aspect/pos intermediates, tanh activation.
    # h columns: act(0:16) | tense_act(16:32) | aspect_act(32:48) | pos_act(48:64)
    h = jnp.tanh(
        jnp.dot(x, w1_ref[...], preferred_element_type=jnp.float32) + b1_ref[...]
    ).astype(jnp.bfloat16)

    # Folded stages 2+3: one [64,128] matmul produces the whole output slab
    #   cols 0:2   token classifier over concat(act,tense,aspect,pos)
    #   cols 2:34  qe | tense | aspect | pos head logits (identity block in M)
    #   cols 34:128 zeros
    slab = jnp.dot(h, m_ref[...], preferred_element_type=jnp.float32) + d_ref[...]
    out_ref[...] = slab.astype(out_ref.dtype)


def pack_params(p):
    """Fuse the per-branch PyTorch Linear weights into the kernel's operands."""
    # Stage-1 fused weight [768, 64] (bf16 for MXU rate / half HBM traffic).
    w1 = jnp.concatenate(
        [p["w_base"], p["w_ti"], p["w_ai"], p["w_pi"]], axis=1
    ).astype(jnp.bfloat16)
    b1 = jnp.concatenate(
        [p["b_base"], p["b_ti"], p["b_ai"], p["b_pi"]], axis=1
    ).astype(jnp.float32)                                   # [1, 64]

    # Block-diagonal per-branch heads W2: [64, 32], heads = h @ W2 + b2.
    w2 = jnp.zeros((FUSED1, FUSED2), jnp.float32)
    w2 = w2.at[0:16, 0:2].set(p["w_qe"])
    w2 = w2.at[16:32, 2:18].set(p["w_t"])
    w2 = w2.at[32:48, 18:27].set(p["w_a"])
    w2 = w2.at[48:64, 27:32].set(p["w_p"])
    b2 = jnp.concatenate(
        [p["b_qe"], p["b_t"], p["b_a"], p["b_p"]], axis=1
    ).astype(jnp.float32)                                   # [1, 32]

    w_tok = p["w_tok"]                                      # [46, 2]
    # A: h -> slab (token classifier's `act` part).
    a = jnp.zeros((FUSED1, SLAB), jnp.float32)
    a = a.at[0:HID_LAYER, TOK_C[0]:TOK_C[1]].set(w_tok[0:HID_LAYER])
    # B: heads -> slab (token classifier's tense|aspect|pos part + identity
    # block copying heads into slab columns 2:34).
    bmat = jnp.zeros((FUSED2, SLAB), jnp.float32)
    bmat = bmat.at[2:FUSED2, TOK_C[0]:TOK_C[1]].set(w_tok[HID_LAYER:CLASSIFIER_SIZE])
    bmat = bmat.at[0:FUSED2, QE_C[0]:POS_C[1]].set(jnp.eye(FUSED2, dtype=jnp.float32))
    # c: slab bias (token-classifier bias only; head biases live in b2).
    c = jnp.zeros((1, SLAB), jnp.float32).at[:, TOK_C[0]:TOK_C[1]].set(p["b_tok"])

    # Fold stages 2+3 exactly:
    #   slab = h @ A + (h @ W2 + b2) @ B + c = h @ (A + W2 @ B) + (c + b2 @ B)
    m = (a + w2 @ bmat).astype(jnp.bfloat16)                # [64, 128]
    d = (c + b2 @ bmat).astype(jnp.float32)                 # [1, 128]

    return {"w1": w1, "b1": b1, "m": m, "d": d}


def _round_up(x, m):
    return ((x + m - 1) // m) * m


def _choose_tile(s, block_rows):
    """Row-tile size: multiple of 16; >=2 roughly even tiles once S > 512."""
    if s <= 512:
        return max(16, _round_up(s, 16))
    return min(block_rows, _round_up(pl.cdiv(s, 2), 16))


def qa_features_forward(hidden_states, fused, *, block_rows=1024):
    """hidden_states: [S, 768] f32. Returns the lane-dense [S, 128] bf16 slab
    (columns tok|qe|tense|aspect|pos|0 per *_C constants); use split_slab() if
    the per-head views are actually needed."""
    S = hidden_states.shape[0]
    block_rows = max(16, _round_up(block_rows, 16))
    ts = _choose_tile(S, block_rows)
    grid = (pl.cdiv(S, ts),)

    resident = lambda i: (0, 0)   # weights/biases stay VMEM-resident across steps
    in_specs = [
        pl.BlockSpec((ts, HIDDEN), lambda i: (i, 0)),       # x tile (pipelined)
        pl.BlockSpec((HIDDEN, FUSED1), resident),           # w1
        pl.BlockSpec((1, FUSED1), resident),                # b1
        pl.BlockSpec((FUSED1, SLAB), resident),             # M = A + W2 @ B
        pl.BlockSpec((1, SLAB), resident),                  # d = c + b2 @ B
    ]
    out_spec = pl.BlockSpec((ts, SLAB), lambda i: (i, 0))

    slab = pl.pallas_call(
        _qa_head_kernel,
        grid=grid,
        in_specs=in_specs,
        out_specs=out_spec,
        out_shape=jax.ShapeDtypeStruct((S, SLAB), jnp.bfloat16),
        compiler_params=pltpu.CompilerParams(
            dimension_semantics=("parallel",),
            vmem_limit_bytes=16 << 20,
        ),
    )(hidden_states, fused["w1"], fused["b1"], fused["m"], fused["d"])
    return slab


def split_slab(slab):
    """Optional per-head views matching the PyTorch return tuple (lazy; avoid
    calling this if downstream can index the slab columns directly)."""
    tok = slab[:, TOK_C[0]:TOK_C[1]]
    qe = slab[:, QE_C[0]:QE_C[1]]
    tense = slab[:, TENSE_C[0]:TENSE_C[1]]
    aspect = slab[:, ASPECT_C[0]:ASPECT_C[1]]
    pos = slab[:, POS_C[0]:POS_C[1]]
    return tok, qe, tense, aspect, pos, 0


def _linear_params(key, fan_in, fan_out):
    """PyTorch nn.Linear default init, stored as [in, out] weight."""
    kw, kb = jax.random.split(key)
    bound = 1.0 / np.sqrt(fan_in)
    w = jax.random.uniform(kw, (fan_in, fan_out), jnp.float32, -bound, bound)
    b = jax.random.uniform(kb, (1, fan_out), jnp.float32, -bound, bound)
    return w, b


def init_params(key):
    keys = jax.random.split(key, 9)
    p = {}
    p["w_base"], p["b_base"] = _linear_params(keys[0], HIDDEN, HID_LAYER)
    p["w_qe"], p["b_qe"] = _linear_params(keys[1], HID_LAYER, N_QEVENT)
    p["w_ti"], p["b_ti"] = _linear_params(keys[2], HIDDEN, HID_LAYER)
    p["w_t"], p["b_t"] = _linear_params(keys[3], HID_LAYER, N_TENSE)
    p["w_ai"], p["b_ai"] = _linear_params(keys[4], HIDDEN, HID_LAYER)
    p["w_a"], p["b_a"] = _linear_params(keys[5], HID_LAYER, N_ASPECT)
    p["w_pi"], p["b_pi"] = _linear_params(keys[6], HIDDEN, HID_LAYER)
    p["w_p"], p["b_p"] = _linear_params(keys[7], HID_LAYER, N_POS)
    p["w_tok"], p["b_tok"] = _linear_params(keys[8], CLASSIFIER_SIZE, N_TOKEN)
    return p


def reference_forward(x, p):
    """Pure-JAX f32 reference mirroring features_forward (dropout = identity)."""
    act = jnp.tanh(x @ p["w_base"] + p["b_base"])
    qe = act @ p["w_qe"] + p["b_qe"]
    tense = jnp.tanh(x @ p["w_ti"] + p["b_ti"]) @ p["w_t"] + p["b_t"]
    aspect = jnp.tanh(x @ p["w_ai"] + p["b_ai"]) @ p["w_a"] + p["b_a"]
    pos = jnp.tanh(x @ p["w_pi"] + p["b_pi"]) @ p["w_p"] + p["b_p"]
    cat = jnp.concatenate([act, tense, aspect, pos], axis=1)
    tok = cat @ p["w_tok"] + p["b_tok"]
    return tok, qe, tense, aspect, pos


def _check(slab, x, params, rtol=2e-2, atol=2e-2):
    got = split_slab(slab)[:5]
    want = reference_forward(x, params)
    for g, w in zip(got, want):
        np.testing.assert_allclose(np.asarray(g.astype(jnp.float32)),
                                   np.asarray(w), rtol=rtol, atol=atol)


if __name__ == "__main__":
    key = jax.random.PRNGKey(0)
    k_x, k_p, k_x2 = jax.random.split(key, 3)
    params = init_params(k_p)
    fused = pack_params(params)

    # Small single-tile (latency) path.
    SEQ = 8
    hidden_states = jax.random.normal(k_x, (SEQ, HIDDEN), jnp.float32) * 0.5
    slab = jax.block_until_ready(qa_features_forward(hidden_states, fused))
    _check(slab, hidden_states, params)

    # Mid-size path: ts = round_up(600/2, 16) = 304 -> 2-step "parallel" grid
    # (even-ish megacore split on v7x), ragged last block handled by Pallas.
    SEQ2 = 600
    hidden_states2 = jax.random.normal(k_x2, (SEQ2, HIDDEN), jnp.float32) * 0.5
    slab2 = jax.block_until_ready(qa_features_forward(hidden_states2, fused))
    _check(slab2, hidden_states2, params)

    print("KERNEL_OK")
</pallas_src>

<mosaic_0001>
module attributes {stable_mosaic.version = 11 : i64} {
  func.func @_qa_head_kernel(%arg0: i32, %arg1: memref<16x768xf32, #tpu.memory_space<vmem>>, %arg2: memref<768x64xbf16, #tpu.memory_space<vmem>>, %arg3: memref<1x64xf32, #tpu.memory_space<vmem>>, %arg4: memref<64x128xbf16, #tpu.memory_space<vmem>>, %arg5: memref<1x128xf32, #tpu.memory_space<vmem>>, %arg6: memref<16x128xbf16, #tpu.memory_space<vmem>>) attributes {dimension_semantics = [#tpu.dimension_semantics<parallel>], iteration_bounds = array<i64: 1>, scalar_prefetch = 0 : i64, scratch_operands = 0 : i64, tpu.core_type = #tpu.core_type<tc>, window_params = [{transform_indices = @transform_0, window_bounds = array<i64: 16, 768>}, {pipeline_mode = #tpu.pipeline_mode<synchronous>, transform_indices = @transform_1, window_bounds = array<i64: 768, 64>}, {pipeline_mode = #tpu.pipeline_mode<synchronous>, transform_indices = @transform_2, window_bounds = array<i64: 1, 64>}, {pipeline_mode = #tpu.pipeline_mode<synchronous>, transform_indices = @transform_3, window_bounds = array<i64: 64, 128>}, {pipeline_mode = #tpu.pipeline_mode<synchronous>, transform_indices = @transform_4, window_bounds = array<i64: 1, 128>}, {transform_indices = @transform_5, window_bounds = array<i64: 16, 128>}]} {
    %c0 = arith.constant 0 : index
    %c0_0 = arith.constant 0 : index
    %0 = vector.load %arg1[%c0, %c0_0] : memref<16x768xf32, #tpu.memory_space<vmem>>, vector<16x768xf32>
    %1 = arith.truncf %0 : vector<16x768xf32> to vector<16x768xbf16>
    %c0_1 = arith.constant 0 : index
    %c0_2 = arith.constant 0 : index
    %2 = vector.load %arg2[%c0_1, %c0_2] : memref<768x64xbf16, #tpu.memory_space<vmem>>, vector<768x64xbf16>
    %cst = arith.constant dense<0.000000e+00> : vector<16x64xf32>
    %3 = tpu.matmul %1, %2, %cst {dimension_numbers = #tpu.dot_dimension_numbers<[1], [0], [0], [1], [0, 0, 1, 1], [], []>} : vector<16x768xbf16>, vector<768x64xbf16>, vector<16x64xf32> -> vector<16x64xf32>
    %c0_3 = arith.constant 0 : index
    %c0_4 = arith.constant 0 : index
    %4 = vector.load %arg3[%c0_3, %c0_4] : memref<1x64xf32, #tpu.memory_space<vmem>>, vector<1x64xf32>
    %5 = vector.broadcast %4 : vector<1x64xf32> to vector<16x64xf32>
    %6 = arith.addf %3, %5 : vector<16x64xf32>
    %7 = math.tanh %6 : vector<16x64xf32>
    %8 = arith.truncf %7 : vector<16x64xf32> to vector<16x64xbf16>
    %c0_5 = arith.constant 0 : index
    %c0_6 = arith.constant 0 : index
    %9 = vector.load %arg4[%c0_5, %c0_6] : memref<64x128xbf16, #tpu.memory_space<vmem>>, vector<64x128xbf16>
    %cst_7 = arith.constant dense<0.000000e+00> : vector<16x128xf32>
    %10 = tpu.matmul %8, %9, %cst_7 {dimension_numbers = #tpu.dot_dimension_numbers<[1], [0], [0], [1], [0, 0, 1, 1], [], []>} : vector<16x64xbf16>, vector<64x128xbf16>, vector<16x128xf32> -> vector<16x128xf32>
    %c0_8 = arith.constant 0 : index
    %c0_9 = arith.constant 0 : index
    %11 = vector.load %arg5[%c0_8, %c0_9] : memref<1x128xf32, #tpu.memory_space<vmem>>, vector<1x128xf32>
    %12 = vector.broadcast %11 : vector<1x128xf32> to vector<16x128xf32>
    %13 = arith.addf %10, %12 : vector<16x128xf32>
    %14 = arith.truncf %13 : vector<16x128xf32> to vector<16x128xbf16>
    %c0_10 = arith.constant 0 : index
    %c0_11 = arith.constant 0 : index
    %15 = vector.load %arg6[%c0_10, %c0_11] : memref<16x128xbf16, #tpu.memory_space<vmem>>, vector<16x128xbf16>
    tpu.vector_store %arg6[%c0_10, %c0_11], %14 {strides = array<i32>} : memref<16x128xbf16, #tpu.memory_space<vmem>>, vector<16x128xbf16>,
    return
  }
  func.func @transform_0(%arg0: i32) -> (i32, i32) {
    %c0_i32 = arith.constant 0 : i32
    %c0_i32_0 = arith.constant 0 : i32
    return %arg0, %c0_i32 : i32, i32
  }
  func.func @transform_1(%arg0: i32) -> (i32, i32) {
    %c0_i32 = arith.constant 0 : i32
    %c0_i32_0 = arith.constant 0 : i32
    %c0_i32_1 = arith.constant 0 : i32
    return %c0_i32, %c0_i32_0 : i32, i32
  }
  func.func @transform_2(%arg0: i32) -> (i32, i32) {
    %c0_i32 = arith.constant 0 : i32
    %c0_i32_0 = arith.constant 0 : i32
    %c0_i32_1 = arith.constant 0 : i32
    return %c0_i32, %c0_i32_0 : i32, i32
  }
  func.func @transform_3(%arg0: i32) -> (i32, i32) {
    %c0_i32 = arith.constant 0 : i32
    %c0_i32_0 = arith.constant 0 : i32
    %c0_i32_1 = arith.constant 0 : i32
    return %c0_i32, %c0_i32_0 : i32, i32
  }
  func.func @transform_4(%arg0: i32) -> (i32, i32) {
    %c0_i32 = arith.constant 0 : i32
    %c0_i32_0 = arith.constant 0 : i32
    %c0_i32_1 = arith.constant 0 : i32
    return %c0_i32, %c0_i32_0 : i32, i32
  }
  func.func @transform_5(%arg0: i32) -> (i32, i32) {
    %c0_i32 = arith.constant 0 : i32
    %c0_i32_0 = arith.constant 0 : i32
    return %arg0, %c0_i32 : i32, i32
  }
}

</mosaic_0001>

<bundles_post_ra>
// kernel: tpu_custom_call.1
= control target key start
LH: loop header
LB: loop body
LE: loop exit
PB: predicated region body
PF: predicated region fallthrough
CT: control target
= control target key end

     0   :  { %10 = vsyncpa [#allocation3], 0  ;;  %vm551_vm0 = vcmask 523264   ;;  %s1126_s0 = inlined_call_operand.vmem [shape: f32[8,768], index: 0, kind: input, shape index: {}]   ;;  %s1127_s1 = inlined_call_operand.vmem [shape: bf16[768,64], index: 1, kind: input, shape index: {}]   ;;  %s1128_s2 = inlined_call_operand.vmem [shape: f32[1,64], index: 2, kind: input, shape index: {}]   ;;  %s1129_s3 = inlined_call_operand.vmem [shape: bf16[64,128], index: 3, kind: input, shape index: {}]   ;;  %s1130_s4 = inlined_call_operand.vmem [shape: f32[1,128], index: 4, kind: input, shape index: {}]   ;;  %s1131_s5 = inlined_call_operand.hbm [shape: bf16[8,128], index: 5, kind: output, shape index: {}]  }
   0x1   :  { %v807_v0 = vld [vmem:[%s1127_s1 + $0x38] sm:$0xff]  ;;  %v806_v3 = vld [vmem:[%s1127_s1 + $0x30] sm:$0xff]  ;;  %v805_v8 = vld [vmem:[%s1127_s1 + $0x28] sm:$0xff] }
   0x2   :  { %v815_v1 = vld [vmem:[%s1127_s1 + $0x78] sm:$0xff]  ;;  %428 = vmatpush.bf16.msra.mxu0 %v807_v0  ;;  %v814_v4 = vld [vmem:[%s1127_s1 + $0x70] sm:$0xff]  ;;  %v813_v9 = vld [vmem:[%s1127_s1 + $0x68] sm:$0xff] }
   0x3   :  { %v823_v2 = vld [vmem:[%s1127_s1 + $0xb8] sm:$0xff]  ;;  %442 = vmatpush.bf16.msra.mxu1 %v815_v1  ;;  %v822_v6 = vld [vmem:[%s1127_s1 + $0xb0] sm:$0xff]  ;;  %v821_v10 = vld [vmem:[%s1127_s1 + $0xa8] sm:$0xff] }
   0x4   :  { %v831_v5 = vld [vmem:[%s1127_s1 + $0xf8] sm:$0xff]  ;;  %456 = vmatpush.bf16.msra.mxu2 %v823_v2  ;;  %v830_v7 = vld [vmem:[%s1127_s1 + $0xf0] sm:$0xff]  ;;  %v829_v11 = vld [vmem:[%s1127_s1 + $0xe8] sm:$0xff] }
   0x5   :  { %470 = vmatpush.bf16.msra.mxu3 %v831_v5  ;;  %v804_v12 = vld [vmem:[%s1127_s1 + $0x20] sm:$0xff]  ;;  %v803_v16 = vld [vmem:[%s1127_s1 + $0x18] sm:$0xff]  ;;  %v802_v20 = vld [vmem:[%s1127_s1 + $0x10] sm:$0xff] }
   0x6   :  { %429 = vmatpush.bf16.msra.mxu0 %v806_v3  ;;  %v812_v13 = vld [vmem:[%s1127_s1 + $0x60] sm:$0xff]  ;;  %v811_v17 = vld [vmem:[%s1127_s1 + $0x58] sm:$0xff]  ;;  %v810_v21 = vld [vmem:[%s1127_s1 + $0x50] sm:$0xff] }
   0x7   :  { %443 = vmatpush.bf16.msra.mxu1 %v814_v4  ;;  %v820_v14 = vld [vmem:[%s1127_s1 + $0xa0] sm:$0xff]  ;;  %v819_v18 = vld [vmem:[%s1127_s1 + $0x98] sm:$0xff]  ;;  %v818_v22 = vld [vmem:[%s1127_s1 + $0x90] sm:$0xff] }
   0x8   :  { %457 = vmatpush.bf16.msra.mxu2 %v822_v6  ;;  %v828_v15 = vld [vmem:[%s1127_s1 + $0xe0] sm:$0xff]  ;;  %v827_v19 = vld [vmem:[%s1127_s1 + $0xd8] sm:$0xff]  ;;  %v826_v23 = vld [vmem:[%s1127_s1 + $0xd0] sm:$0xff] }
   0x9   :  { %471 = vmatpush.bf16.msra.mxu3 %v830_v7  ;;  %v801_v24 = vld [vmem:[%s1127_s1 + $0x8] sm:$0xff]  ;;  %v800_v28 = vld [vmem:[%s1127_s1] sm:$0xff]  ;;  %v28_v31 = vld [vmem:[%s1126_s0 + $0x30] sm:$0xff] }
   0xa   :  { %430 = vmatpush.bf16.msra.mxu0 %v805_v8  ;;  %v809_v25 = vld [vmem:[%s1127_s1 + $0x48] sm:$0xff]  ;;  %v808_v29 = vld [vmem:[%s1127_s1 + $0x40] sm:$0xff]  ;;  %v29_v33 = vld [vmem:[%s1126_s0 + $0x38] sm:$0xff] }
   0xb   :  { %444 = vmatpush.bf16.msra.mxu1 %v813_v9  ;;  %v817_v26 = vld [vmem:[%s1127_s1 + $0x88] sm:$0xff]  ;;  %v22_v30 = vld [vmem:[%s1126_s0] sm:$0xff]  ;;  %v839_v34 = vld [vmem:[%s1127_s1 + $0x138] sm:$0xff] }
   0xc   :  { %458 = vmatpush.bf16.msra.mxu2 %v821_v10  ;;  %v825_v27 = vld [vmem:[%s1127_s1 + $0xc8] sm:$0xff]  ;;  %v847_v35 = vld [vmem:[%s1127_s1 + $0x178] sm:$0xff]  ;;  %v816_v36 = vld [vmem:[%s1127_s1 + $0x80] sm:$0xff]  ;;  %v34_v40 = vpack.c.bf16 %v28_v31, %v22_v30 }
   0xd   :  { %472 = vmatpush.bf16.msra.mxu3 %v829_v11  ;;  %v23_v32 = vld [vmem:[%s1126_s0 + $0x8] sm:$0xff]  ;;  %v824_v37 = vld [vmem:[%s1127_s1 + $0xc0] sm:$0xff]  ;;  %v24_v38 = vld [vmem:[%s1126_s0 + $0x10] sm:$0xff] }
   0xe   :  { %431 = vmatpush.bf16.msra.mxu0 %v804_v12  ;;  %v30_v39 = vld [vmem:[%s1126_s0 + $0x40] sm:$0xff]  ;;  %v25_v41 = vld [vmem:[%s1126_s0 + $0x18] sm:$0xff]  ;;  %v31_v42 = vld [vmem:[%s1126_s0 + $0x48] sm:$0xff]  ;;  %v35_v43 = vpack.c.bf16 %v29_v33, %v23_v32 }
   0xf   :  { %445 = vmatpush.bf16.msra.mxu1 %v812_v13  ;;  %v838_v44 = vld [vmem:[%s1127_s1 + $0x130] sm:$0xff]  ;;  %v36_v46 = vpack.c.bf16 %v30_v39, %v24_v38  ;;  %v37_v47 = vpack.c.bf16 %v31_v42, %v25_v41  ;;  %v837_v48 = vld [vmem:[%s1127_s1 + $0x128] sm:$0xff]  ;;  %v836_v50 = vld [vmem:[%s1127_s1 + $0x120] sm:$0xff] }
  0x10   :  { %459 = vmatpush.bf16.msra.mxu2 %v820_v14  ;;  %v846_v45 = vld [vmem:[%s1127_s1 + $0x170] sm:$0xff]  ;;  %v845_v49 = vld [vmem:[%s1127_s1 + $0x168] sm:$0xff]  ;;  %v844_v51 = vld [vmem:[%s1127_s1 + $0x160] sm:$0xff] }
  0x11   :  { %473 = vmatpush.bf16.msra.mxu3 %v828_v15  ;;  %v835_v52 = vld [vmem:[%s1127_s1 + $0x118] sm:$0xff]  ;;  %v834_v54 = vld [vmem:[%s1127_s1 + $0x110] sm:$0xff]  ;;  %v833_v56 = vld [vmem:[%s1127_s1 + $0x108] sm:$0xff] }
  0x12   :  { %432 = vmatpush.bf16.msra.mxu0 %v803_v16  ;;  %v843_v53 = vld [vmem:[%s1127_s1 + $0x158] sm:$0xff]  ;;  %v842_v55 = vld [vmem:[%s1127_s1 + $0x150] sm:$0xff]  ;;  %v841_v57 = vld [vmem:[%s1127_s1 + $0x148] sm:$0xff] }
  0x13   :  { %446 = vmatpush.bf16.msra.mxu1 %v811_v17  ;;  %v832_v58 = vld [vmem:[%s1127_s1 + $0x100] sm:$0xff]  ;;  %v32_v61 = vld [vmem:[%s1126_s0 + $0x50] sm:$0xff]  ;;  %v27_v62 = vld [vmem:[%s1126_s0 + $0x28] sm:$0xff] }
  0x14   :  { %460 = vmatpush.bf16.msra.mxu2 %v819_v18  ;;  %v840_v59 = vld [vmem:[%s1127_s1 + $0x140] sm:$0xff]  ;;  %v33_v63 = vld [vmem:[%s1126_s0 + $0x58] sm:$0xff]  ;;  %v850_v3 = vld [vmem:[%s1129_s3 + $0x10] sm:$0xff] }
  0x15   :  { %474 = vmatpush.bf16.msra.mxu3 %v827_v19  ;;  %v26_v60 = vld [vmem:[%s1126_s0 + $0x20] sm:$0xff]  ;;  %v39_v1 = vpack.c.bf16 %v33_v63, %v27_v62  ;;  %v851_v2 = vld [vmem:[%s1129_s3 + $0x18] sm:$0xff]  ;;  %v849_v4 = vld [vmem:[%s1129_s3 + $0x8] sm:$0xff] }
  0x16   :  { %433 = vmatpush.bf16.msra.mxu0 %v802_v20  ;;  %v38_v0 = vpack.c.bf16 %v32_v61, %v26_v60  ;;  %v848_v7 = vld [vmem:[%s1129_s3] sm:$0xff] }
  0x17   :  { %447 = vmatpush.bf16.msra.mxu1 %v810_v21  ;;  %v860_v8 = vld [vmem:[%s1128_s2] ss:$0 sm:$0xff] }
  0x18   :  { %461 = vmatpush.bf16.msra.mxu2 %v818_v22 }
  0x19   :  { %475 = vmatpush.bf16.msra.mxu3 %v826_v23 }
  0x1a   :  { %434 = vmatpush.bf16.msra.mxu0 %v801_v24 }
  0x1b   :  { %448 = vmatpush.bf16.msra.mxu1 %v809_v25 }
  0x1c   :  { %462 = vmatpush.bf16.msra.mxu2 %v817_v26 }
  0x1d   :  { %476 = vmatpush.bf16.msra.mxu3 %v825_v27 }
  0x1e   :  { %435 = vmatpush.bf16.msra.mxu0 %v800_v28 }
  0x1f   :  { %449 = vmatpush.bf16.msra.mxu1 %v808_v29 }
  0x20   :  { %463 = vmatpush.bf16.msra.mxu2 %v816_v36 }
  0x21   :  { %477 = vmatpush.bf16.msra.mxu3 %v824_v37  ;;  %436 = vmatmul.bf16.vlgmr.msra.gmra.mxu0 %v34_v40 }
  0x22   :  { %484 = vmatpush.bf16.msrb.mxu0 %v839_v34  ;;  %450 = vmatmul.bf16.vlgmr.msra.gmra.mxu1 %v35_v43 }
  0x23   :  { %498 = vmatpush.bf16.msrb.mxu1 %v847_v35  ;;  %464 = vmatmul.bf16.vlgmr.msra.gmra.mxu2 %v36_v46  ;;  %v861_v35 = vld [vmem:[%s1130_s4] ss:$0 sm:$0xff] }
  0x24   :  { %478 = vmatmul.bf16.vlgmr.msra.gmra.mxu3 %v37_v47  ;;  %559 = vmatpush.bf16.msrb.mxu2 %v851_v2 }
  0x26   :  { %485 = vmatpush.bf16.msrb.mxu0 %v838_v44 }
  0x27   :  { %499 = vmatpush.bf16.msrb.mxu1 %v846_v45 }
  0x28   :  { %560 = vmatpush.bf16.msrb.mxu2 %v850_v3 }
  0x2a   :  { %486 = vmatpush.bf16.msrb.mxu0 %v837_v48 }
  0x2b   :  { %500 = vmatpush.bf16.msrb.mxu1 %v845_v49 }
  0x2c   :  { %561 = vmatpush.bf16.msrb.mxu2 %v849_v4 }
  0x2e   :  { %487 = vmatpush.bf16.msrb.mxu0 %v836_v50 }
  0x2f   :  { %501 = vmatpush.bf16.msrb.mxu1 %v844_v51 }
  0x30   :  { %562 = vmatpush.bf16.msrb.mxu2 %v848_v7 }
  0x32   :  { %488 = vmatpush.bf16.msrb.mxu0 %v835_v52 }
  0x33   :  { %502 = vmatpush.bf16.msrb.mxu1 %v843_v53 }
  0x36   :  { %489 = vmatpush.bf16.msrb.mxu0 %v834_v54 }
  0x37   :  { %503 = vmatpush.bf16.msrb.mxu1 %v842_v55 }
  0x3a   :  { %490 = vmatpush.bf16.msrb.mxu0 %v833_v56 }
  0x3b   :  { %504 = vmatpush.bf16.msrb.mxu1 %v841_v57 }
  0x3e   :  { %491 = vmatpush.bf16.msrb.mxu0 %v832_v58 }
  0x3f   :  { %505 = vmatpush.bf16.msrb.mxu1 %v840_v59 }
  0x41   :  { %492 = vmatmul.bf16.vlgmr.msrb.gmra.mxu0 %v38_v0 }
  0x42   :  { %506 = vmatmul.bf16.vlgmr.msrb.gmra.mxu1 %v39_v1 }
  0x9e   :  { %v437_v5 = vpop.f32.mrf.mxu0 }
  0x9f   :  { %v451_v6 = vpop.f32.mrf.mxu1  ;;  %v438_v10 = vadd.f32 %v860_v8, %v437_v5 }
  0xa1   :  { %v452_v13 = vadd.f32 %v451_v6, %v438_v10 }
  0xa6   :  { %v465_v9 = vpop.f32.mrf.mxu2  ;;  %v439_v11 = vpop.f32.mrf.mxu0 }
  0xa7   :  { %v453_v12 = vpop.f32.mrf.mxu1  ;;  %v479_v14 = vpop.f32.mrf.mxu3  ;;  %v440_v15 = vadd.f32 %v860_v8, %v439_v11  ;;  %v466_v16 = vadd.f32 %v465_v9, %v452_v13 }
  0xa9   :  { %v454_v17 = vadd.f32 %v453_v12, %v440_v15  ;;  %v480_v21 = vadd.f32 %v479_v14, %v466_v16 }
  0xae   :  { %v467_v18 = vpop.f32.mrf.mxu2 }
  0xaf   :  { %v468_v22 = vadd.f32 %v467_v18, %v454_v17  ;;  %v481_v23 = vpop.f32.mrf.mxu3 }
  0xb1   :  { %v482_v25 = vadd.f32 %v481_v23, %v468_v22 }
  0xbe   :  { %v493_v19 = vpop.f32.mrf.mxu0 }
  0xbf   :  { %v507_v20 = vpop.f32.mrf.mxu1  ;;  %v494_v24 = vadd.f32 %v493_v19, %v480_v21 }
  0xc1   :  { %v508_v26 = vadd.f32 %v507_v20, %v494_v24 }
  0xc3   :  { %862 = vtanh.f32 %v508_v26 }
  0xc6   :  { %v495_v27 = vpop.f32.mrf.mxu0 }
  0xc7   :  { %v496_v28 = vadd.f32 %v495_v27, %v482_v25  ;;  %v509_v29 = vpop.f32.mrf.mxu1 }
  0xc9   :  { %v510_v30 = vadd.f32 %v509_v29, %v496_v28  ;;  %v863_v31 = vpop.eup %862 }
  0xcb   :  { %864 = vtanh.f32 %v510_v30 }
  0xd1   :  { %v865_v32 = vpop.eup %864 }
  0xd2   :  { %v514_v33 = vpack.c.bf16 %v865_v32, %v863_v31 }
  0xd4   :  { %799 = vmatmul.msk.bf16.vlgmr.msrb.gmra.mxu2 %vm551_vm0, %v514_v33 }
 0x157   :  { %v564_v34 = vpop.f32.mrf.mxu2 }
 0x158   :  { %v565_v37 = vadd.f32 %v861_v35, %v564_v34 }
 0x15f   :  { %v566_v36 = vpop.f32.mrf.mxu2 }
 0x160   :  { %v567_v38 = vadd.f32 %v861_v35, %v566_v36 }
 0x162   :  { %v855_v39 = vpack.c.bf16 %v567_v38, %v565_v37 }
 0x164   :  { %856 = vst [vmem:[#allocation2] sm:$0xff] %v855_v39  }
 0x165   :  { %576 = vsyncadd [#allocation3], 64  ;;  %s579_s23 = sshll.u32 %s1131_s5, 4  ;;  %s892_s24 = smov [#allocation2]   ;;  %s580_s23 = int_to_ptr.hbm [resolvable:$true] %s579_s23 }
 0x166   :  { %s577_s25 = sshll.u32 %s892_s24, 4  ;;  %s893_s26 = smov 64   ;;  %s578_s25 = int_to_ptr.vmem [resolvable:$true] %s577_s25 }
 0x167   :  { %s894_s27 = smov 4  }
 0x168   :  { %585 = dma.vmem_to_hbm [thread:$0]  %s578_s25, 64, %s580_s23, [#allocation3], %s893_s26, %s893_s26, %s894_s27  }
 0x169   :  { %890 = dma.done.wait [#allocation3], 128  }
 0x16a   :  { %891 = vsyncadd [#allocation3], 4294967168 }
 0x16b   :  { %590 = vsyncpa [#allocation3], 1 }

</bundles_post_ra>
